<compile_context>
chip_gen: v7x
topology: tpu7x:2x2x1
jax: 0.10.0
libtpu: 0.0.40
codegen_flags: <defaults>
</compile_context>

<pallas_src>
import functools

import jax
import jax.numpy as jnp
from jax.experimental import pallas as pl
from jax.experimental.pallas import tpu as pltpu


def _round_up(n, m):
    return ((n + m - 1) // m) * m


def _cdiv(a, b):
    return (a + b - 1) // b


def _vmem_budget_bytes():
    """Per-core VMEM budget: real capacity minus headroom (never exceeds physical)."""
    cap = 64 << 20  # conservative fallback (v7x per-TensorCore)
    try:
        info = pltpu.get_tpu_info()
        c = getattr(info, "vmem_capacity_bytes", None)
        if c:
            cap = int(c)
    except Exception:
        pass
    return max(min(cap - (12 << 20), int(cap * 0.85)), 16 << 20)


# --------------------------------------------------------------------------- #
# Kernels
# --------------------------------------------------------------------------- #
def _ffn_resident_kernel(x_ref, w1_ref, b1_ref, w2_ref, b2_ref, g_ref, beta_ref,
                         o_ref, *, eps, d_model):
    """Weights fully resident in VMEM; 1-D grid over row tiles."""
    # --- LayerNorm (Annotated-Transformer style: unbiased std, eps added to std) ---
    x = x_ref[...].astype(jnp.float32)
    mean = jnp.mean(x, axis=-1, keepdims=True)
    centered = x - mean
    var = jnp.sum(centered * centered, axis=-1, keepdims=True) / (d_model - 1)
    inv = pl.reciprocal(jnp.sqrt(var) + eps, approx=False)   # exact; off MXU critical path
    gamma = g_ref[...].astype(jnp.float32)
    beta = beta_ref[...].astype(jnp.float32)
    xn = (centered * (gamma * inv) + beta).astype(w1_ref.dtype)

    # --- FFN: relu(xn @ w1 + b1) @ w2 + b2 + residual ---
    # TODO(synk): dropout_1 / dropout_2 are identity (inference mode).
    h = jnp.dot(xn, w1_ref[...], preferred_element_type=jnp.float32)
    h = jnp.maximum(h + b1_ref[...].astype(jnp.float32), 0.0)
    acc = jnp.dot(h.astype(w2_ref.dtype), w2_ref[...],
                  preferred_element_type=jnp.float32)
    o_ref[...] = (acc + b2_ref[...].astype(jnp.float32) + x).astype(o_ref.dtype)


def _ffn_tiled_kernel(x_ref, w1_ref, b1_ref, w2_ref, b2_ref, g_ref, beta_ref,
                      o_ref, xn_ref, acc_ref, *, eps, d_model):
    """Fallback for huge d_ff: inner 'arbitrary' reduction over d_ff chunks."""
    j = pl.program_id(1)

    @pl.when(j == 0)
    def _():
        x = x_ref[...].astype(jnp.float32)
        mean = jnp.mean(x, axis=-1, keepdims=True)
        centered = x - mean
        var = jnp.sum(centered * centered, axis=-1, keepdims=True) / (d_model - 1)
        inv = pl.reciprocal(jnp.sqrt(var) + eps, approx=False)
        gamma = g_ref[...].astype(jnp.float32)
        beta = beta_ref[...].astype(jnp.float32)
        xn_ref[...] = (centered * (gamma * inv) + beta).astype(xn_ref.dtype)

    h = jnp.dot(xn_ref[...], w1_ref[...], preferred_element_type=jnp.float32)
    h = jnp.maximum(h + b1_ref[...].astype(jnp.float32), 0.0)
    contrib = jnp.dot(h.astype(w2_ref.dtype), w2_ref[...],
                      preferred_element_type=jnp.float32)

    @pl.when(j == 0)
    def _():
        acc_ref[...] = contrib                  # no zero-init store for the accumulator

    @pl.when(j > 0)
    def _():
        acc_ref[...] += contrib

    @pl.when(j == pl.num_programs(1) - 1)
    def _():
        out = (acc_ref[...] + b2_ref[...].astype(jnp.float32)
               + x_ref[...].astype(jnp.float32))
        o_ref[...] = out.astype(o_ref.dtype)


# --------------------------------------------------------------------------- #
# Wrapper
# --------------------------------------------------------------------------- #
def positionwise_feed_forward(x, w1, b1, w2, b2, gamma, beta, *,
                              eps=1e-6, compute_dtype=None,
                              tile_rows=1024, tile_ff=1024):
    """x: [batch, seq, d_model]; w1: [d_model, d_ff]; w2: [d_ff, d_model].

    compute_dtype: MXU operand dtype (e.g. jnp.bfloat16 for f32 models, f32
    accumulation kept).  Default None keeps the model dtype.
    """
    batch, seq, d_model = x.shape
    d_ff = w1.shape[1]
    rows = batch * seq

    cdt = jnp.dtype(compute_dtype) if compute_dtype is not None else jnp.dtype(x.dtype)
    if w1.dtype != cdt:
        w1 = w1.astype(cdt)
    if w2.dtype != cdt:
        w2 = w2.astype(cdt)

    item_c = cdt.itemsize
    item_x = jnp.dtype(x.dtype).itemsize
    budget = _vmem_budget_bytes()

    d_ff_r = _round_up(d_ff, 128)  # lane-aligned d_ff used on the resident path

    def resident_bytes(tm_):
        wts = 2 * (2 * d_model * d_ff_r + d_ff_r) * item_c   # w1, w2, b1 (double-buffered)
        act = 2 * 2 * tm_ * d_model * item_x                 # x in + out (double-buffered)
        inter = tm_ * d_ff_r * 4 + 2 * tm_ * d_model * 4     # h (f32) + f32 temporaries
        return wts + act + inter + 8 * d_model * item_x

    def tiled_bytes(tm_, tf_):
        wts = 2 * (2 * d_model * tf_ + tf_) * item_c
        act = 2 * 2 * tm_ * d_model * item_x
        scr = tm_ * d_model * item_c + tm_ * d_model * 4     # xn scratch + f32 accumulator
        inter = tm_ * tf_ * 4
        return wts + act + scr + inter + 8 * d_model * item_x

    # ---------------- tile / path selection ----------------
    tm = min(tile_rows, _round_up(rows, 8))
    tf = None
    use_resident = 2 * (2 * d_model * d_ff_r + d_ff_r) * item_c <= 0.75 * budget
    if use_resident:
        while resident_bytes(tm) > budget and tm > 8:
            tm = max(8, _round_up(tm // 2, 8))
        use_resident = resident_bytes(tm) <= budget
    if use_resident:
        # v7x has 2 TensorCores: make sure the 'parallel' row axis has >= 2 tiles
        # (weights stay resident, so the extra tile is essentially free).
        if rows > 8 and _cdiv(rows, tm) < 2:
            tm = max(8, _round_up(_cdiv(rows, 2), 8))
    else:
        tf = min(tile_ff, d_ff_r)
        while tiled_bytes(tm, tf) > budget and tf > 256:
            tf = max(256, _round_up(tf // 2, 128))
        while tiled_bytes(tm, tf) > budget and tm > 64:
            tm = max(64, _round_up(tm // 2, 8))
        # Prefer a tf that divides d_ff to avoid an in-jit weight-padding copy.
        if d_ff % tf != 0:
            for cand in range(tf, 127, -128):
                if d_ff % cand == 0:
                    tf = cand
                    break

    # ---------------- operands ----------------
    x2d = x.reshape(rows, d_model)
    rows_p = _round_up(rows, tm)
    if rows_p != rows:
        x2d = jnp.pad(x2d, ((0, rows_p - rows), (0, 0)))

    b2_2d = b2.reshape(1, d_model)
    g_2d = gamma.reshape(1, d_model)
    beta_2d = beta.reshape(1, d_model)

    if use_resident:
        if d_ff_r != d_ff:
            # Rare ragged d_ff: lane-align once (small weights by construction here).
            w1 = jnp.pad(w1, ((0, 0), (0, d_ff_r - d_ff)))
            b1 = jnp.pad(b1, ((0, d_ff_r - d_ff),))
            w2 = jnp.pad(w2, ((0, d_ff_r - d_ff), (0, 0)))
        b1_2d = b1.reshape(1, d_ff_r)

        out2d = pl.pallas_call(
            functools.partial(_ffn_resident_kernel, eps=eps, d_model=d_model),
            out_shape=jax.ShapeDtypeStruct((rows_p, d_model), x.dtype),
            grid_spec=pltpu.PrefetchScalarGridSpec(
                num_scalar_prefetch=0,
                grid=(rows_p // tm,),
                in_specs=[
                    pl.BlockSpec((tm, d_model), lambda i: (i, 0)),      # x rows
                    pl.BlockSpec((d_model, d_ff_r), lambda i: (0, 0)),  # w1 (resident)
                    pl.BlockSpec((1, d_ff_r), lambda i: (0, 0)),        # b1 (resident)
                    pl.BlockSpec((d_ff_r, d_model), lambda i: (0, 0)),  # w2 (resident)
                    pl.BlockSpec((1, d_model), lambda i: (0, 0)),       # b2
                    pl.BlockSpec((1, d_model), lambda i: (0, 0)),       # gamma
                    pl.BlockSpec((1, d_model), lambda i: (0, 0)),       # beta
                ],
                out_specs=pl.BlockSpec((tm, d_model), lambda i: (i, 0)),
            ),
            compiler_params=pltpu.CompilerParams(
                dimension_semantics=("parallel",),
                vmem_limit_bytes=budget),
        )(x2d, w1, b1_2d, w2, b2_2d, g_2d, beta_2d)
    else:
        d_ff_p = _round_up(d_ff, tf)
        if d_ff_p != d_ff:
            # TODO(synk): only reached for huge, non-128-divisible d_ff; this pad
            # materializes one extra copy of the weights per call.
            w1 = jnp.pad(w1, ((0, 0), (0, d_ff_p - d_ff)))
            b1 = jnp.pad(b1, ((0, d_ff_p - d_ff),))
            w2 = jnp.pad(w2, ((0, d_ff_p - d_ff), (0, 0)))
        b1_2d = b1.reshape(1, d_ff_p)

        out2d = pl.pallas_call(
            functools.partial(_ffn_tiled_kernel, eps=eps, d_model=d_model),
            out_shape=jax.ShapeDtypeStruct((rows_p, d_model), x.dtype),
            grid_spec=pltpu.PrefetchScalarGridSpec(
                num_scalar_prefetch=0,
                grid=(rows_p // tm, d_ff_p // tf),
                in_specs=[
                    pl.BlockSpec((tm, d_model), lambda i, j: (i, 0)),   # x rows
                    pl.BlockSpec((d_model, tf), lambda i, j: (0, j)),   # w1 column chunk
                    pl.BlockSpec((1, tf), lambda i, j: (0, j)),         # b1 chunk
                    pl.BlockSpec((tf, d_model), lambda i, j: (j, 0)),   # w2 row chunk
                    pl.BlockSpec((1, d_model), lambda i, j: (0, 0)),    # b2
                    pl.BlockSpec((1, d_model), lambda i, j: (0, 0)),    # gamma
                    pl.BlockSpec((1, d_model), lambda i, j: (0, 0)),    # beta
                ],
                out_specs=pl.BlockSpec((tm, d_model), lambda i, j: (i, 0)),
                scratch_shapes=[
                    pltpu.VMEM((tm, d_model), cdt),          # normalized activations
                    pltpu.VMEM((tm, d_model), jnp.float32),  # f32 accumulator
                ],
            ),
            compiler_params=pltpu.CompilerParams(
                dimension_semantics=("parallel", "arbitrary"),
                vmem_limit_bytes=budget),
        )(x2d, w1, b1_2d, w2, b2_2d, g_2d, beta_2d)

    if rows_p != rows:
        out2d = out2d[:rows]
    return out2d.reshape(batch, seq, d_model)


# --------------------------------------------------------------------------- #
# Reference + self-test
# --------------------------------------------------------------------------- #
def _reference(x, w1, b1, w2, b2, gamma, beta, eps=1e-6):
    xf = x.astype(jnp.float32)
    mean = xf.mean(-1, keepdims=True)
    d = xf.shape[-1]
    var = jnp.sum((xf - mean) ** 2, -1, keepdims=True) / (d - 1)
    std = jnp.sqrt(var)
    xn = gamma.astype(jnp.float32) * (xf - mean) / (std + eps) + beta.astype(jnp.float32)
    h = jnp.maximum(xn @ w1.astype(jnp.float32) + b1.astype(jnp.float32), 0.0)
    return (h @ w2.astype(jnp.float32) + b2.astype(jnp.float32) + xf).astype(x.dtype)


if __name__ == "__main__":
    key = jax.random.PRNGKey(0)

    def make_case(batch, seq, d_model, d_ff, dtype, k):
        kx, k1, kb1, k2, kb2 = jax.random.split(k, 5)
        x = jax.random.normal(kx, (batch, seq, d_model), dtype=jnp.float32).astype(dtype)
        w1 = (jax.random.normal(k1, (d_model, d_ff), dtype=jnp.float32)
              * (1.0 / d_model ** 0.5)).astype(dtype)
        b1 = (jax.random.normal(kb1, (d_ff,), dtype=jnp.float32) * 0.01).astype(dtype)
        w2 = (jax.random.normal(k2, (d_ff, d_model), dtype=jnp.float32)
              * (1.0 / d_ff ** 0.5)).astype(dtype)
        b2 = (jax.random.normal(kb2, (d_model,), dtype=jnp.float32) * 0.01).astype(dtype)
        gamma = jnp.ones((d_model,), dtype=dtype)   # LayerNorm a_2
        beta = jnp.zeros((d_model,), dtype=dtype)   # LayerNorm b_2
        return x, w1, b1, w2, b2, gamma, beta

    ka, kb, kc = jax.random.split(key, 3)

    # Tolerance note: reciprocal is exact now; remaining slack covers MXU / XLA
    # default-precision f32 matmul differences vs the pure-XLA reference.
    tol = dict(atol=1e-2, rtol=1e-2)

    # Case 1: aligned shapes — x: [2, 8, 128], d_ff = 256 (resident-weights path).
    args = make_case(2, 8, 128, 256, jnp.float32, ka)
    out = jax.block_until_ready(positionwise_feed_forward(*args))
    ref = _reference(*args)
    assert out.shape == args[0].shape
    assert jnp.allclose(out, ref, **tol), "mismatch vs reference (aligned)"

    # Case 2: ragged rows / d_ff — exercises row padding + ragged d_ff handling.
    args = make_case(2, 7, 128, 200, jnp.float32, kb)
    out = jax.block_until_ready(positionwise_feed_forward(*args))
    ref = _reference(*args)
    assert out.shape == args[0].shape
    assert jnp.allclose(out, ref, **tol), "mismatch vs reference (ragged)"

    # Case 3: bf16 MXU operands for an f32 model (perf knob), f32 accumulation.
    args = make_case(2, 8, 128, 256, jnp.float32, kc)
    out = jax.block_until_ready(
        positionwise_feed_forward(*args, compute_dtype=jnp.bfloat16))
    ref = _reference(*args)
    assert out.shape == args[0].shape
    assert jnp.allclose(out, ref, atol=1.5e-1, rtol=1e-1), "mismatch vs reference (bf16)"

    print("KERNEL_OK")
</pallas_src>

<mosaic_0001>
module attributes {stable_mosaic.version = 11 : i64} {
  func.func @_ffn_resident_kernel(%arg0: i32, %arg1: memref<8x128xf32, #tpu.memory_space<vmem>>, %arg2: memref<128x256xf32, #tpu.memory_space<vmem>>, %arg3: memref<1x256xf32, #tpu.memory_space<vmem>>, %arg4: memref<256x128xf32, #tpu.memory_space<vmem>>, %arg5: memref<1x128xf32, #tpu.memory_space<vmem>>, %arg6: memref<1x128xf32, #tpu.memory_space<vmem>>, %arg7: memref<1x128xf32, #tpu.memory_space<vmem>>, %arg8: memref<8x128xf32, #tpu.memory_space<vmem>>) attributes {dimension_semantics = [#tpu.dimension_semantics<parallel>], iteration_bounds = array<i64: 2>, scalar_prefetch = 0 : i64, scratch_operands = 0 : i64, tpu.core_type = #tpu.core_type<tc>, window_params = [{transform_indices = @transform_0, window_bounds = array<i64: 8, 128>}, {pipeline_mode = #tpu.pipeline_mode<synchronous>, transform_indices = @transform_1, window_bounds = array<i64: 128, 256>}, {pipeline_mode = #tpu.pipeline_mode<synchronous>, transform_indices = @transform_2, window_bounds = array<i64: 1, 256>}, {pipeline_mode = #tpu.pipeline_mode<synchronous>, transform_indices = @transform_3, window_bounds = array<i64: 256, 128>}, {pipeline_mode = #tpu.pipeline_mode<synchronous>, transform_indices = @transform_4, window_bounds = array<i64: 1, 128>}, {pipeline_mode = #tpu.pipeline_mode<synchronous>, transform_indices = @transform_5, window_bounds = array<i64: 1, 128>}, {pipeline_mode = #tpu.pipeline_mode<synchronous>, transform_indices = @transform_6, window_bounds = array<i64: 1, 128>}, {transform_indices = @transform_7, window_bounds = array<i64: 8, 128>}]} {
    %c0 = arith.constant 0 : index
    %c0_0 = arith.constant 0 : index
    %0 = vector.load %arg1[%c0, %c0_0] : memref<8x128xf32, #tpu.memory_space<vmem>>, vector<8x128xf32>
    %cst = arith.constant dense<0.000000e+00> : vector<8xf32>
    %1 = vector.multi_reduction <add>, %0, %cst [1] : vector<8x128xf32> to vector<8xf32>
    %2 = vector.shape_cast %1 : vector<8xf32> to vector<8x1xf32>
    %cst_1 = arith.constant 1.280000e+02 : f32
    %3 = vector.broadcast %cst_1 : f32 to vector<8x1xf32>
    %4 = arith.divf %2, %3 : vector<8x1xf32>
    %5 = vector.broadcast %4 : vector<8x1xf32> to vector<8x128xf32>
    %6 = arith.subf %0, %5 : vector<8x128xf32>
    %7 = arith.mulf %6, %6 : vector<8x128xf32>
    %cst_2 = arith.constant dense<0.000000e+00> : vector<8xf32>
    %8 = vector.multi_reduction <add>, %7, %cst_2 [1] : vector<8x128xf32> to vector<8xf32>
    %9 = vector.shape_cast %8 : vector<8xf32> to vector<8x1xf32>
    %cst_3 = arith.constant 1.270000e+02 : f32
    %10 = vector.broadcast %cst_3 : f32 to vector<8x1xf32>
    %11 = arith.divf %9, %10 : vector<8x1xf32>
    %12 = math.sqrt %11 : vector<8x1xf32>
    %cst_4 = arith.constant 9.99999997E-7 : f32
    %13 = vector.broadcast %cst_4 : f32 to vector<8x1xf32>
    %14 = arith.addf %12, %13 : vector<8x1xf32>
    %15 = tpu.reciprocal %14 : vector<8x1xf32> -> vector<8x1xf32>
    %c0_5 = arith.constant 0 : index
    %c0_6 = arith.constant 0 : index
    %16 = vector.load %arg6[%c0_5, %c0_6] : memref<1x128xf32, #tpu.memory_space<vmem>>, vector<1x128xf32>
    %c0_7 = arith.constant 0 : index
    %c0_8 = arith.constant 0 : index
    %17 = vector.load %arg7[%c0_7, %c0_8] : memref<1x128xf32, #tpu.memory_space<vmem>>, vector<1x128xf32>
    %18 = vector.broadcast %16 : vector<1x128xf32> to vector<8x128xf32>
    %19 = vector.broadcast %15 : vector<8x1xf32> to vector<8x128xf32>
    %20 = arith.mulf %18, %19 : vector<8x128xf32>
    %21 = arith.mulf %6, %20 : vector<8x128xf32>
    %22 = vector.broadcast %17 : vector<1x128xf32> to vector<8x128xf32>
    %23 = arith.addf %21, %22 : vector<8x128xf32>
    %c0_9 = arith.constant 0 : index
    %c0_10 = arith.constant 0 : index
    %24 = vector.load %arg2[%c0_9, %c0_10] : memref<128x256xf32, #tpu.memory_space<vmem>>, vector<128x256xf32>
    %cst_11 = arith.constant dense<0.000000e+00> : vector<8x256xf32>
    %25 = tpu.matmul %23, %24, %cst_11 {dimension_numbers = #tpu.dot_dimension_numbers<[1], [0], [0], [1], [0, 0, 1, 1], [], []>} : vector<8x128xf32>, vector<128x256xf32>, vector<8x256xf32> -> vector<8x256xf32>
    %c0_12 = arith.constant 0 : index
    %c0_13 = arith.constant 0 : index
    %26 = vector.load %arg3[%c0_12, %c0_13] : memref<1x256xf32, #tpu.memory_space<vmem>>, vector<1x256xf32>
    %27 = vector.broadcast %26 : vector<1x256xf32> to vector<8x256xf32>
    %28 = arith.addf %25, %27 : vector<8x256xf32>
    %cst_14 = arith.constant 0.000000e+00 : f32
    %29 = vector.broadcast %cst_14 : f32 to vector<8x256xf32>
    %30 = arith.maximumf %28, %29 : vector<8x256xf32>
    %c0_15 = arith.constant 0 : index
    %c0_16 = arith.constant 0 : index
    %31 = vector.load %arg4[%c0_15, %c0_16] : memref<256x128xf32, #tpu.memory_space<vmem>>, vector<256x128xf32>
    %cst_17 = arith.constant dense<0.000000e+00> : vector<8x128xf32>
    %32 = tpu.matmul %30, %31, %cst_17 {dimension_numbers = #tpu.dot_dimension_numbers<[1], [0], [0], [1], [0, 0, 1, 1], [], []>} : vector<8x256xf32>, vector<256x128xf32>, vector<8x128xf32> -> vector<8x128xf32>
    %c0_18 = arith.constant 0 : index
    %c0_19 = arith.constant 0 : index
    %33 = vector.load %arg5[%c0_18, %c0_19] : memref<1x128xf32, #tpu.memory_space<vmem>>, vector<1x128xf32>
    %34 = vector.broadcast %33 : vector<1x128xf32> to vector<8x128xf32>
    %35 = arith.addf %32, %34 : vector<8x128xf32>
    %36 = arith.addf %35, %0 : vector<8x128xf32>
    %c0_20 = arith.constant 0 : index
    %c0_21 = arith.constant 0 : index
    %37 = vector.load %arg8[%c0_20, %c0_21] : memref<8x128xf32, #tpu.memory_space<vmem>>, vector<8x128xf32>
    tpu.vector_store %arg8[%c0_20, %c0_21], %36 {strides = array<i32>} : memref<8x128xf32, #tpu.memory_space<vmem>>, vector<8x128xf32>,
    return
  }
  func.func @transform_0(%arg0: i32) -> (i32, i32) {
    %c0_i32 = arith.constant 0 : i32
    %c0_i32_0 = arith.constant 0 : i32
    return %arg0, %c0_i32 : i32, i32
  }
  func.func @transform_1(%arg0: i32) -> (i32, i32) {
    %c0_i32 = arith.constant 0 : i32
    %c0_i32_0 = arith.constant 0 : i32
    %c0_i32_1 = arith.constant 0 : i32
    return %c0_i32, %c0_i32_0 : i32, i32
  }
  func.func @transform_2(%arg0: i32) -> (i32, i32) {
    %c0_i32 = arith.constant 0 : i32
    %c0_i32_0 = arith.constant 0 : i32
    %c0_i32_1 = arith.constant 0 : i32
    return %c0_i32, %c0_i32_0 : i32, i32
  }
  func.func @transform_3(%arg0: i32) -> (i32, i32) {
    %c0_i32 = arith.constant 0 : i32
    %c0_i32_0 = arith.constant 0 : i32
    %c0_i32_1 = arith.constant 0 : i32
    return %c0_i32, %c0_i32_0 : i32, i32
  }
  func.func @transform_4(%arg0: i32) -> (i32, i32) {
    %c0_i32 = arith.constant 0 : i32
    %c0_i32_0 = arith.constant 0 : i32
    %c0_i32_1 = arith.constant 0 : i32
    return %c0_i32, %c0_i32_0 : i32, i32
  }
  func.func @transform_5(%arg0: i32) -> (i32, i32) {
    %c0_i32 = arith.constant 0 : i32
    %c0_i32_0 = arith.constant 0 : i32
    %c0_i32_1 = arith.constant 0 : i32
    return %c0_i32, %c0_i32_0 : i32, i32
  }
  func.func @transform_6(%arg0: i32) -> (i32, i32) {
    %c0_i32 = arith.constant 0 : i32
    %c0_i32_0 = arith.constant 0 : i32
    %c0_i32_1 = arith.constant 0 : i32
    return %c0_i32, %c0_i32_0 : i32, i32
  }
  func.func @transform_7(%arg0: i32) -> (i32, i32) {
    %c0_i32 = arith.constant 0 : i32
    %c0_i32_0 = arith.constant 0 : i32
    return %arg0, %c0_i32 : i32, i32
  }
}

</mosaic_0001>

<bundles_post_ra>
// kernel: tpu_custom_call.1
= control target key start
LH: loop header
LB: loop body
LE: loop exit
PB: predicated region body
PF: predicated region fallthrough
CT: control target
= control target key end

     0   :  { %12 = vsyncpa [#allocation3], 0  ;;  %s1347_s0 = inlined_call_operand.hbm [shape: f32[16,128], index: 0, kind: input, shape index: {}]   ;;  %s1348_s1 = inlined_call_operand.hbm [shape: f32[128,256], index: 1, kind: input, shape index: {}]   ;;  %s1349_s2 = inlined_call_operand.vmem [shape: f32[1,256], index: 2, kind: input, shape index: {}]   ;;  %s1350_s3 = inlined_call_operand.hbm [shape: f32[256,128], index: 3, kind: input, shape index: {}]   ;;  %s1351_s4 = inlined_call_operand.vmem [shape: f32[1,128], index: 4, kind: input, shape index: {}]   ;;  %s1352_s5 = inlined_call_operand.vmem [shape: f32[1,128], index: 5, kind: input, shape index: {}]   ;;  %s1353_s6 = inlined_call_operand.vmem [shape: f32[1,128], index: 6, kind: input, shape index: {}]   ;;  %s1354_s7 = inlined_call_operand.hbm [shape: f32[16,128], index: 7, kind: output, shape index: {}]  }
   0x1   :  { %14 = vsyncpa [#allocation3 + $0x1], 0 }
   0x2   :  { %15 = vsyncpa [#allocation6], 0 }
   0x3   :  { %16 = vsyncpa [#allocation4], 0 }
   0x4   :  { %18 = vsyncpa [#allocation4 + $0x1], 0  ;;  %s1092_s24 = smov 0   ;;  %s1094_s25 = smov 0  }
   0x5   :  { %s1096_s26 = smov 0   ;;  %s1098_s27 = smov 0  }
   0x6 LB: > { %s1113_s28 = sadd.s32 4294967295, %s1041_s27   ;;  %s691_s29 = sadd.s32 4294967294, %s1041_s27   ;;  %s1041_s27 = sphi %s1098_s27, %s1374_s27   ;;  %s1037_s26 = sphi %s1096_s26, %s1373_s26   ;;  %s1033_s25 = sphi %s1094_s25, %s1372_s25   ;;  %s1029_s24 = sphi %s1092_s24, %s1371_s24  }
   0x7   : > { %p44_p0 = scmp.ne.s32.totalorder %s1033_s25, %s1029_s24  ;;  %p1355_p1 = scmp.eq.s32.totalorder %s1113_s28, 0 }
   0x8   : > { %p200_p3 = scmp.eq.s32.totalorder %s691_s29, 1  ;;  %p692_p5 = scmp.ge.s32.totalorder %s1041_s27, 1 }
   0x9   : > { %p1122_p4 = por %p1355_p1, %p44_p0  ;;  %p207_p7 = scmp.lt.s32.totalorder %s1041_s27, 3 }
   0xa   : > { %p1127_p6 = por %p200_p3, %p44_p0  ;;  %s1043_s10 = smov [#allocation5]  }
   0xb   : > { %s1358_s30 = scalar_select %p1122_p4, 1, 0 }
   0xc   : > { %s1359_s8 = scalar_select %p1127_p6, 1, 0 }
   0xd   : > { %p1132_p8 = pnand %p692_p5, %p207_p7  ;;  %s219_s11 = sshll.u32 %s1043_s10, 4  ;;  %s1136_s11 = int_to_ptr.vmem [resolvable:$true] %s219_s11 }
   0xe   : > { %s1044_s13 = smov [#allocation7]   ;;  %s885_s17 = scalar_lea.hbm %s1348_s1, 4096 }
   0xf   : > { %p821_p9 = pneg %p1132_p8  ;;  %s235_s14 = sshll.u32 %s1044_s13, 4  ;;  %s1147_s14 = int_to_ptr.vmem [resolvable:$true] %s235_s14 }
  0x10   : > { %p886_p12 = scmp.ne.s32.totalorder %s1348_s1, %s885_s17  ;;  %p892_p5 = scmp.lt.u32.totalorder %s885_s17, %s1348_s1 }
  0x11   : > { %p1143_p11 = pnand %p821_p9, %p1355_p1 }
  0x13   : > { %p887_p13 = pneg %p1143_p11 }
  0x15   : > { %p888_p0 = pnand %p887_p13, %p886_p12 }
  0x17   : > { %p889_p3 = pneg %p888_p0 }
  0x19   : > { %p894_p7 = pnand %p892_p5, %p889_p3 }
  0x1b   : > { %897 = shalt.err (!%p894_p7)
}
  0x1c   : > { %s898_s22 = scalar_lea.vmem %s1136_s11, 4096  ;;  %p906_p2 = scmp.lt.s32.totalorder %s1136_s11, %s1136_s11 }
  0x1d   : > { %p899_p9 = scmp.ne.s32.totalorder %s1136_s11, %s898_s22  ;;  %p907_p12 = scmp.lt.s32.totalorder %s898_s22, %s898_s22 }
  0x1f   : > { %p901_p10 = pnand %p899_p9, %p887_p13  ;;  %p908_p0 = por %p907_p12, %p906_p2 }
  0x21   : > { %p902_p1 = pneg %p901_p10 }
  0x23   : > { %p909_p6 = pnand %p908_p0, %p902_p1 }
  0x25   : > { %912 = shalt.err (!%p909_p6)
}
  0x26   : > { %s1045_s23 = smov 256   ;;  %s1046_s29 = smov 16  }
  0x27   : > { %824 = dma.hbm_to_vmem [thread:$0]  (!%p1143_p11), %s1348_s1, 4096, %s1136_s11, [#allocation6], %s1045_s23, %s1045_s23, %s1046_s29  }
  0x28   : > { %s913_s17 = scalar_lea.hbm %s1350_s3, 4096 }
  0x29   : > { %p914_p2 = scmp.ne.s32.totalorder %s1350_s3, %s913_s17  ;;  %p920_p10 = scmp.lt.u32.totalorder %s913_s17, %s1350_s3 }
  0x2b   : > { %p916_p1 = pnand %p914_p2, %p887_p13 }
  0x2d   : > { %p917_p6 = pneg %p916_p1 }
  0x2f   : > { %p922_p3 = pnand %p920_p10, %p917_p6 }
  0x31   : > { %925 = shalt.err (!%p922_p3)
}
  0x32   : > { %s926_s11 = scalar_lea.vmem %s1147_s14, 4096  ;;  %p934_p12 = scmp.lt.s32.totalorder %s1147_s14, %s1147_s14 }
  0x33   : > { %p927_p5 = scmp.ne.s32.totalorder %s1147_s14, %s926_s11  ;;  %p935_p0 = scmp.lt.s32.totalorder %s926_s11, %s926_s11 }
  0x35   : > { %p929_p7 = pnand %p927_p5, %p887_p13  ;;  %p936_p2 = por %p935_p0, %p934_p12 }
  0x37   : > { %p930_p9 = pneg %p929_p7 }
  0x39   : > { %p937_p1 = pnand %p936_p2, %p930_p9 }
  0x3b   : > { %940 = shalt.err (!%p937_p1)
}
  0x3c   : > { %s1047_s22 = smov 128   ;;  %s1048_s23 = smov 8  }
  0x3d   : > { %827 = dma.hbm_to_vmem [thread:$0]  (!%p1143_p11), %s1350_s3, 4096, %s1147_s14, [#allocation6], %s1047_s22, %s1047_s22, %s1048_s23  }
  0x3e   : > { %s1202_s13 = sadd.s32 1, %s1041_s27   ;;  %s31_s16 = sadd.s32 1, %s1037_s26 }
  0x3f   : > { %s28_s15 = ssub.s32 %s1041_s27, %s1202_s13  ;;  %p38_p6 = scmp.ne.s32.totalorder %s1037_s26, %s1033_s25 }
  0x40   : > { %p29_p13 = scmp.eq.s32.totalorder %s28_s15, 0  ;;  %p39_p10 = scmp.eq.s32.totalorder %s1041_s27, 0 }
  0x41   : > { %p1362_p5 = scmp.eq.s32.totalorder %s1113_s28, 1  ;;  %p838_p9 = scmp.lt.s32.totalorder %s1041_s27, 2 }
  0x42   : > { %s1211_s17 = scalar_select %p29_p13, %s1037_s26, %s31_s16  }
  0x43   : > { %p40_p3 = por %p39_p10, %p38_p6  ;;  %p1215_p7 = por %p1362_p5, %p38_p6 }
  0x44   : > { %s258_s12 = sand.u32 1, %s1037_s26   ;;  %s697_s14 = sshll.u32 %s1041_s27, 7 }
  0x45   : > { %s1363_s18 = scalar_select %p1215_p7, 1, 0 }
  0x46   : > { %s696_s19 = sshll.u32 %s258_s12, 3  ;;  %s1225_s11 = scalar_lea.hbm %s1347_s0, %s697_s14 }
  0x47   : > { %s262_s22 = scalar_lea.vmem [#allocation2], %s696_s19  ;;  %p1229_p11 = pnand %p838_p9, %p40_p3 }
  0x48   : > { %s269_s23 = sshll.u32 %s262_s22, 4  ;;  %s259_s10 = scalar_lea.sflag [#allocation3], %s258_s12  ;;  %s1227_s23 = int_to_ptr.vmem [resolvable:$true] %s269_s23 }
  0x49   : > { %s941_s15 = scalar_lea.hbm %s1225_s11, 128  ;;  %p943_p0 = pneg %p1229_p11 }
  0x4a   : > { %p942_p12 = scmp.ne.s32.totalorder %s1225_s11, %s941_s15  ;;  %s946_s14 = scalar_lea.hbm %s1347_s0, 256 }
  0x4b   : > { %p947_p13 = scmp.lt.u32.totalorder %s1225_s11, %s1347_s0  ;;  %p948_p6 = scmp.lt.u32.totalorder %s946_s14, %s941_s15 }
  0x4c   : > { %p944_p2 = pnand %p943_p0, %p942_p12  ;;  %p950_p3 = scmp.lt.u32.totalorder %s941_s15, %s1225_s11 }
  0x4d   : > { %p949_p10 = por %p948_p6, %p947_p13 }
  0x4e   : > { %p945_p1 = pneg %p944_p2 }
  0x4f   : > { %p951_p5 = por %p950_p3, %p949_p10 }
  0x51   : > { %p952_p9 = pnand %p951_p5, %p945_p1 }
  0x53   : > { %955 = shalt.err (!%p952_p9)
}
  0x54   : > { %s956_s12 = scalar_lea.vmem %s1227_s23, 128  ;;  %s1049_s22 = smov [#allocation2]  }
  0x55   : > { %p957_p12 = scmp.ne.s32.totalorder %s1227_s23, %s956_s12  ;;  %s961_s16 = sshll.u32 %s1049_s22, 4  ;;  %s962_s16 = int_to_ptr.vmem [resolvable:$false] %s961_s16 }
  0x56   : > { %s963_s19 = scalar_lea.vmem %s962_s16, 256  ;;  %p964_p4 = scmp.lt.s32.totalorder %s1227_s23, %s962_s16 }
  0x57   : > { %p959_p2 = pnand %p957_p12, %p943_p0  ;;  %p965_p13 = scmp.lt.s32.totalorder %s963_s19, %s956_s12 }
  0x59   : > { %p960_p7 = pneg %p959_p2  ;;  %p966_p6 = por %p965_p13, %p964_p4 }
  0x5b   : > { %p967_p10 = pnand %p966_p6, %p960_p7 }
  0x5d   : > { %970 = shalt.err (!%p967_p10)
}
  0x5e   : > { %831 = dma.hbm_to_vmem [thread:$0]  (!%p1229_p11), %s1225_s11, 128, %s1227_s23, %s259_s10  }
  0x5f   : > { %278 = sbr.rel (%p1132_p8) target bundleno = 884 (0x374), region = 48  ;;  %s1261_s15 = sand.u32 (!%p1132_p8), 1, %s1033_s25  }
  0x60   : > { %s699_s14 = sshll.u32 (!%p1132_p8), %s1261_s15, 3  ;;  %s281_s20 = scalar_lea.sflag (!%p1132_p8), [#allocation3], %s1261_s15 }
  0x61   : > { %s284_s21 = scalar_lea.vmem (!%p1132_p8), [#allocation2], %s699_s14  ;;  %p1365_p4 = scmp.ne.s32.totalorder (!%p1132_p8), %s1358_s30, 0 }
  0x66   : > { %1016 = dma.done.wait (%p1365_p4), %s281_s20, 128  }
  0x67   : > { %1018 = vsyncadd (%p1365_p4), %s281_s20, 4294967168  ;;  %p1366_p7 = scmp.eq.s32.totalorder %s1113_s28, 0 }
  0x69   : > { %1020 = dma.done.wait (%p1366_p7), [#allocation6], 8192   ;;  %p1367_p8 = pmov %p1366_p7 }
  0x6a   : > { %v1275_v0 = vld [vmem:[%s284_s21] sm:$0xff]  ;;  %v361_v5 = vld [vmem:[#allocation5 + $0x8] sm:$0xff]  ;;  %v360_v8 = vld [vmem:[#allocation5] sm:$0xff]  ;;  %v1050_v36 = vmov 0.0   ;;  %s707_s16 = sshll.u32 %s1113_s28, 7  ;;  %s322_s19 = scalar_lea.vmem [#allocation8], %s699_s14 }
  0x6b   : > { %1022 = vsyncadd (%p1367_p8), [#allocation6], 4294959104  ;;  %324 = vadd.xlane.f32.xlu0 %v1275_v0  ;;  %v363_v6 = vld [vmem:[#allocation5 + $0x18] sm:$0xff]  ;;  %v362_v9 = vld [vmem:[#allocation5 + $0x10] sm:$0xff]  ;;  %468 = vmatprep.mubr.f32.mxu0 %v1050_v36  ;;  %s602_s20 = sshll.u32 %s322_s19, 4  ;;  %s1303_s9 = scalar_lea.hbm %s1354_s7, %s707_s16  ;;  %s1305_s20 = int_to_ptr.vmem [resolvable:$true] %s602_s20 }
  0x6c   : > { %v745_v7 = vpack.c.bf16 %v363_v6, %v361_v5  ;;  %v747_v10 = vpack.c.bf16 %v362_v9, %v360_v8  ;;  %v365_v11 = vld [vmem:[#allocation5 + $0x28] sm:$0xff]  ;;  %v367_v12 = vld [vmem:[#allocation5 + $0x38] sm:$0xff]  ;;  %v364_v14 = vld [vmem:[#allocation5 + $0x20] sm:$0xff]  ;;  %s589_s11 = scalar_lea.sflag [#allocation4], %s1261_s15  ;;  %s971_s23 = scalar_lea.vmem %s1305_s20, 128 }
  0x6d   : > { %v749_v13 = vpack.c.bf16 %v367_v12, %v365_v11  ;;  %v366_v15 = vld [vmem:[#allocation5 + $0x30] sm:$0xff]  ;;  %v369_v17 = vld [vmem:[#allocation5 + $0x48] sm:$0xff]  ;;  %v371_v18 = vld [vmem:[#allocation5 + $0x58] sm:$0xff]  ;;  %p972_p11 = scmp.ne.s32.totalorder %s1305_s20, %s971_s23  ;;  %p1368_p0 = scmp.ne.s32.totalorder %s1363_s18, 0 }
  0x6e   : > { %746 = vmatprep.subr.bf16.mxu0 %v745_v7  ;;  %v751_v16 = vpack.c.bf16 %v366_v15, %v364_v14  ;;  %v753_v19 = vpack.c.bf16 %v371_v18, %v369_v17  ;;  %v368_v20 = vld [vmem:[#allocation5 + $0x40] sm:$0xff]  ;;  %v370_v21 = vld [vmem:[#allocation5 + $0x50] sm:$0xff]  ;;  %v373_v23 = vld [vmem:[#allocation5 + $0x68] sm:$0xff]  ;;  %s1051_s28 = smov [#allocation8]  }
  0x6f   : > { %748 = vmatpush1.bf16.msra.mxu0 %v747_v10  ;;  %v755_v22 = vpack.c.bf16 %v370_v21, %v368_v20  ;;  %v375_v24 = vld [vmem:[#allocation5 + $0x78] sm:$0xff]  ;;  %v372_v26 = vld [vmem:[#allocation5 + $0x60] sm:$0xff]  ;;  %v374_v27 = vld [vmem:[#allocation5 + $0x70] sm:$0xff]  ;;  %p973_p1 = pnand %p972_p11, %p1368_p0  ;;  %s975_s14 = sshll.u32 %s1051_s28, 4  ;;  %s976_s14 = int_to_ptr.vmem [resolvable:$false] %s975_s14 }
  0x70   : > { %750 = vmatprep.subr.bf16.mxu0 %v749_v13  ;;  %v757_v25 = vpack.c.bf16 %v375_v24, %v373_v23  ;;  %v759_v28 = vpack.c.bf16 %v374_v27, %v372_v26  ;;  %v377_v29 = vld [vmem:[#allocation5 + $0x88] sm:$0xff]  ;;  %v379_v30 = vld [vmem:[#allocation5 + $0x98] sm:$0xff]  ;;  %v376_v31 = vld [vmem:[#allocation5 + $0x80] sm:$0xff]  ;;  %s977_s29 = scalar_lea.vmem %s976_s14, 256  ;;  %p978_p5 = scmp.lt.s32.totalorder %s1305_s20, %s976_s14 }
  0x71   : > { %v761_v32 = vpack.c.bf16 %v379_v30, %v377_v29  ;;  %v378_v33 = vld [vmem:[#allocation5 + $0x90] sm:$0xff]  ;;  %v381_v34 = vld [vmem:[#allocation5 + $0xa8] sm:$0xff]  ;;  %v383_v35 = vld [vmem:[#allocation5 + $0xb8] sm:$0xff]  ;;  %p974_p3 = pneg %p973_p1  ;;  %p979_p9 = scmp.lt.s32.totalorder %s977_s29, %s971_s23 }
  0x72   : > { %v763_v37 = vpack.c.bf16 %v378_v33, %v376_v31  ;;  %v765_v38 = vpack.c.bf16 %v383_v35, %v381_v34  ;;  %v380_v39 = vld [vmem:[#allocation5 + $0xa0] sm:$0xff]  ;;  %v382_v40 = vld [vmem:[#allocation5 + $0xb0] sm:$0xff]  ;;  %v385_v41 = vld [vmem:[#allocation5 + $0xc8] sm:$0xff] }
  0x73   : > { %752 = vmatpush1.bf16.msra.mxu0 %v751_v16  ;;  %v387_v42 = vld [vmem:[#allocation5 + $0xd8] sm:$0xff]  ;;  %v767_v43 = vpack.c.bf16 %v382_v40, %v380_v39  ;;  %v384_v45 = vld [vmem:[#allocation5 + $0xc0] sm:$0xff]  ;;  %v386_v46 = vld [vmem:[#allocation5 + $0xd0] sm:$0xff]  ;;  %p980_p12 = por %p979_p9, %p978_p5 }
  0x74   : > { %754 = vmatprep.subr.bf16.mxu0 %v753_v19  ;;  %v769_v44 = vpack.c.bf16 %v387_v42, %v385_v41  ;;  %v389_v47 = vld [vmem:[#allocation5 + $0xe8] sm:$0xff]  ;;  %v391_v48 = vld [vmem:[#allocation5 + $0xf8] sm:$0xff]  ;;  %v771_v49 = vpack.c.bf16 %v386_v46, %v384_v45  ;;  %v388_v51 = vld [vmem:[#allocation5 + $0xe0] sm:$0xff] }
  0x75   : > { %v773_v50 = vpack.c.bf16 %v391_v48, %v389_v47  ;;  %v390_v52 = vld [vmem:[#allocation5 + $0xf0] sm:$0xff]  ;;  %v493_v54 = vld [vmem:[#allocation7 + $0x80] sm:$0xff]  ;;  %v494_v55 = vld [vmem:[#allocation7 + $0x88] sm:$0xff]  ;;  %p981_p2 = pnand %p980_p12, %p974_p3 }
  0x76   : > { %v775_v53 = vpack.c.bf16 %v390_v52, %v388_v51  ;;  %v477_v56 = vld [vmem:[#allocation7] sm:$0xff]  ;;  %v777_v57 = vpack.c.bf16 %v494_v55, %v493_v54  ;;  %v478_v58 = vld [vmem:[#allocation7 + $0x8] sm:$0xff]  ;;  %v495_v59 = vld [vmem:[#allocation7 + $0x90] sm:$0xff]  ;;  %v394_v54 = vlaneseq }
  0x77   : > { %756 = vmatpush1.bf16.msra.mxu0 %v755_v22  ;;  %v496_v60 = vld [vmem:[#allocation7 + $0x98] sm:$0xff]  ;;  %v779_v61 = vpack.c.bf16 %v478_v58, %v477_v56  ;;  %v479_v63 = vld [vmem:[#allocation7 + $0x10] sm:$0xff]  ;;  %v481_v7 = vld [vmem:[#allocation7 + $0x20] sm:$0xff] }
  0x78   : > { %758 = vmatprep.subr.bf16.mxu0 %v757_v25  ;;  %v781_v62 = vpack.c.bf16 %v496_v60, %v495_v59  ;;  %778 = vmatprep.subr.bf16.mxu1 %v777_v57  ;;  %v482_v8 = vld [vmem:[#allocation7 + $0x28] sm:$0xff]  ;;  %v499_v9 = vld [vmem:[#allocation7 + $0xb0] sm:$0xff]  ;;  %v500_v10 = vld [vmem:[#allocation7 + $0xb8] sm:$0xff]  ;;  %v395_v55 = vshrl.u32 %v394_v54, 7 }
  0x79   : > { %780 = vmatpush3.bf16.msra.mxu1 %v779_v61  ;;  %v787_v11 = vpack.c.bf16 %v482_v8, %v481_v7  ;;  %v789_v12 = vpack.c.bf16 %v500_v10, %v499_v9  ;;  %v483_v13 = vld [vmem:[#allocation7 + $0x30] sm:$0xff]  ;;  %v484_v14 = vld [vmem:[#allocation7 + $0x38] sm:$0xff]  ;;  %v501_v15 = vld [vmem:[#allocation7 + $0xc0] sm:$0xff] }
  0x7a   : > { %782 = vmatprep.subr.bf16.mxu1 %v781_v62  ;;  %v502_v16 = vld [vmem:[#allocation7 + $0xc8] sm:$0xff]  ;;  %v791_v17 = vpack.c.bf16 %v484_v14, %v483_v13  ;;  %v485_v19 = vld [vmem:[#allocation7 + $0x40] sm:$0xff]  ;;  %v503_v21 = vld [vmem:[#allocation7 + $0xd0] sm:$0xff]  ;;  %v396_v56 = vsub.s32 0, %v395_v55  ;;  %v400_v57 = vsub.s32 1, %v395_v55 }
  0x7b   : > { %760 = vmatpush1.bf16.msra.mxu0 %v759_v28  ;;  %v793_v18 = vpack.c.bf16 %v502_v16, %v501_v15  ;;  %v486_v20 = vld [vmem:[#allocation7 + $0x48] sm:$0xff]  ;;  %v504_v22 = vld [vmem:[#allocation7 + $0xd8] sm:$0xff]  ;;  %v487_v25 = vld [vmem:[#allocation7 + $0x50] sm:$0xff] }
  0x7c   : > { %762 = vmatprep.subr.bf16.mxu0 %v761_v32  ;;  %v795_v23 = vpack.c.bf16 %v486_v20, %v485_v19  ;;  %v797_v24 = vpack.c.bf16 %v504_v22, %v503_v21  ;;  %v488_v26 = vld [vmem:[#allocation7 + $0x58] sm:$0xff]  ;;  %v505_v27 = vld [vmem:[#allocation7 + $0xe0] sm:$0xff]  ;;  %v506_v28 = vld [vmem:[#allocation7 + $0xe8] sm:$0xff] }
  0x7d   : > { %v799_v29 = vpack.c.bf16 %v488_v26, %v487_v25  ;;  %v801_v30 = vpack.c.bf16 %v506_v28, %v505_v27  ;;  %v703_v39 = vld [vmem:[%s1352_s5] ss:$0 sm:$0xff]  ;;  %v489_v45 = vld [vmem:[#allocation7 + $0x60] sm:$0xff]  ;;  %v490_v46 = vld [vmem:[#allocation7 + $0x68] sm:$0xff] }
  0x7e   : > { %v704_v42 = vld [vmem:[%s1353_s6] ss:$0 sm:$0xff]  ;;  %v803_v47 = vpack.c.bf16 %v490_v46, %v489_v45  ;;  %v492_v52 = vld [vmem:[#allocation7 + $0x78] sm:$0xff] }
  0x7f   : > { %764 = vmatpush1.bf16.msra.mxu0 %v763_v37  ;;  %v507_v48 = vld [vmem:[#allocation7 + $0xf0] sm:$0xff] }
  0x80   : > { %766 = vmatprep.subr.bf16.mxu0 %v765_v38  ;;  %v491_v51 = vld [vmem:[#allocation7 + $0x70] sm:$0xff] }
  0x83   : > { %768 = vmatpush1.bf16.msra.mxu0 %v767_v43 }
  0x84   : > { %770 = vmatprep.subr.bf16.mxu0 %v769_v44 }
  0x87   : > { %772 = vmatpush1.bf16.msra.mxu0 %v771_v49  ;;  %v508_v49 = vld [vmem:[#allocation7 + $0xf8] sm:$0xff] }
  0x88   : > { %774 = vmatprep.subr.bf16.mxu0 %v773_v50  ;;  %v805_v50 = vpack.c.bf16 %v508_v49, %v507_v48 }
  0x8b   : > { %776 = vmatpush1.bf16.msra.mxu0 %v775_v53  ;;  %v807_v53 = vpack.c.bf16 %v492_v52, %v491_v51 }
  0xf8   : > { %v325_v1 = vpop.xlane.xlu0 %324 }
  0xf9   : > { %v327_v2 = vmul.f32 0.0078125, %v325_v1  ;;  %v480_v1 = vld [vmem:[#allocation7 + $0x18] sm:$0xff] }
  0xfa   : > { %v783_v5 = vpack.c.bf16 %v480_v1, %v479_v63 }
  0xfb   : > { %v1279_v3 = vsub.f32 %v1275_v0, %v327_v2  ;;  %v497_v2 = vld [vmem:[#allocation7 + $0xa0] sm:$0xff] }
  0xfc   : > { %784 = vmatpush3.bf16.msra.mxu1 %v783_v5  ;;  %v705_v5 = vld [vmem:[%s1351_s4] ss:$0 sm:$0xff] }
  0xfd   : > { %v329_v4 = vmul.f32 %v1279_v3, %v1279_v3 }
  0xff   : > { %330 = vadd.xlane.f32.xlu0 %v329_v4  ;;  %v498_v4 = vld [vmem:[#allocation7 + $0xa8] sm:$0xff] }
 0x100   : > { %v785_v6 = vpack.c.bf16 %v498_v4, %v497_v2 }
 0x102   : > { %786 = vmatprep.subr.bf16.mxu1 %v785_v6 }
 0x103   : > { %788 = vmatpush3.bf16.msra.mxu1 %v787_v11 }
 0x104   : > { %790 = vmatprep.subr.bf16.mxu1 %v789_v12 }
 0x107   : > { %792 = vmatpush3.bf16.msra.mxu1 %v791_v17 }
 0x108   : > { %794 = vmatprep.subr.bf16.mxu1 %v793_v18 }
 0x10b   : > { %796 = vmatpush3.bf16.msra.mxu1 %v795_v23 }
 0x10c   : > { %798 = vmatprep.subr.bf16.mxu1 %v797_v24 }
 0x10f   : > { %800 = vmatpush3.bf16.msra.mxu1 %v799_v29 }
 0x110   : > { %802 = vmatprep.subr.bf16.mxu1 %v801_v30 }
 0x113   : > { %804 = vmatpush3.bf16.msra.mxu1 %v803_v47 }
 0x114   : > { %806 = vmatprep.subr.bf16.mxu1 %v805_v50 }
 0x117   : > { %808 = vmatpush3.bf16.msra.mxu1 %v807_v53 }
 0x18c   : > { %v331_v31 = vpop.xlane.xlu0 %330 }
 0x18d   : > { %v333_v32 = vmul.f32 0.007874016, %v331_v31 }
 0x18f   : > { %881 = vrsqrt.f32 %v333_v32  ;;  %vm336_vm0 = vcmp.eq.f32.partialorder %v333_v32, inf  ;;  %v339_v35 = vand.u32 2147483648, %v333_v32  ;;  %vm338_vm1 = vcmp.eq.f32.partialorder %v333_v32, 0.0 }
 0x199   : > { %v882_v33 = vpop.eup %881 }
 0x19a   : > { %v335_v34 = vmul.f32 %v882_v33, %v333_v32 }
 0x19c   : > { %v337_v36 = vsel %vm336_vm0, %v333_v32, %v335_v34 }
 0x19d   : > { %v340_v37 = vsel %vm338_vm1, %v339_v35, %v337_v36 }
 0x19e   : > { %v341_v38 = vadd.f32 1e-06, %v340_v37 }
 0x1a0   : > { %883 = vrcp.f32 %v341_v38 }
 0x1aa   : > { %v884_v40 = vpop.eup %883 }
 0x1ab   : > { %v351_v41 = vmul.f32 %v884_v40, %v703_v39 }
 0x1ad   : > { %v352_v43 = vmul.f32 %v351_v41, %v1279_v3  ;;  %v392_v3 = vld [vmem:[%s1349_s2] sm:$0x3] }
 0x1ae   : > { %v397_v58 = vrot.slane %v392_v3, %v396_v56  ;;  %v401_v59 = vrot.slane %v392_v3, %v400_v57 }
 0x1af   : > { %v359_v44 = vadd.f32 %v704_v42, %v352_v43 }
 0x1b1   : > { %469 = vmatmul.mubr.f32.vlgmr.msra.gmra.mrb[0].mxu0 %v359_v44 }
 0x284   : > { %v470_v60 = vpop.f32.mrb[0].mxu0 }
 0x285   : > { %v471_v61 = vadd.f32 %v470_v60, %v397_v58  ;;  %v472_v62 = vpop.f32.mrb[1].mxu0 }
 0x286   : > { %v473_v63 = vadd.f32 %v472_v62, %v401_v59 }
 0x287   : > { %v475_v2 = vmax.f32 %v471_v61, 0.0 }
 0x288   : > { %v476_v1 = vmax.f32 %v473_v63, 0.0 }
 0x28a   : > { %580 = vmatprep.mubr.f32.mxu1 %v476_v1 }
 0x28b   : > { %581 = vmatmul.mubr.f32.vlgmr.msra.gmra.mrb[0].mxu1 %v475_v2 }
 0x35e   : > { %v742_v4 = vpop.f32.mrb[0].mxu1 }
 0x35f   : > { %v743_v6 = vpop.f32.mrb[1].mxu1 }
 0x360   : > { %v744_v7 = vadd.f32 %v743_v6, %v742_v4 }
 0x362   : > { %v583_v8 = vadd.f32 %v744_v7, %v705_v5 }
 0x364   : > { %v586_v9 = vadd.f32 %v583_v8, %v1275_v0 }
 0x366   : > { %587 = vst [vmem:[%s322_s19] sm:$0xff] %v586_v9 }
 0x367   : > { %984 = shalt.err (!%p981_p2)
}
 0x368   : > { %s985_s15 = scalar_lea.hbm %s1303_s9, 128  ;;  %s989_s22 = scalar_lea.hbm %s1354_s7, 256 }
 0x369   : > { %p986_p13 = scmp.ne.s32.totalorder %s1303_s9, %s985_s15  ;;  %p990_p4 = scmp.lt.u32.totalorder %s1303_s9, %s1354_s7 }
 0x36a   : > { %p991_p7 = scmp.lt.u32.totalorder %s989_s22, %s985_s15  ;;  %p993_p11 = scmp.lt.u32.totalorder %s985_s15, %s1303_s9 }
 0x36b   : > { %p987_p6 = pnand %p986_p13, %p1368_p0 }
 0x36c   : > { %p992_p8 = por %p991_p7, %p990_p4 }
 0x36d   : > { %p988_p10 = pneg %p987_p6 }
 0x36e   : > { %p994_p1 = por %p993_p11, %p992_p8 }
 0x370   : > { %p995_p3 = pnand %p994_p1, %p988_p10 }
 0x372   : > { %998 = shalt.err (!%p995_p3)
}
 0x373   : > { %819 = dma.vmem_to_hbm [thread:$0]  (%p1368_p0), %s1305_s20, 128, %s1303_s9, %s589_s11  }
 0x374 PF: > { %s614_s21 = sand.u32 1, %s1029_s24   ;;  %p1369_p5 = scmp.ne.s32.totalorder %s1359_s8, 0 }
 0x375   : > { %p1370_p9 = scmp.ge.s32.totalorder %s1041_s27, 2  ;;  %s615_s30 = scalar_lea.sflag [#allocation4], %s614_s21 }
 0x377   : > { %p833_p12 = pnand %p1370_p9, %p1369_p5 }
 0x379   : > { %1024 = dma.done.wait (!%p833_p12), %s615_s30, 128  }
 0x37a   : > { %1026 = vsyncadd (!%p833_p12), %s615_s30, 4294967168  ;;  %p21_p2 = scmp.ge.s32.totalorder %s1202_s13, 4   ;;  %s1371_s24 = smov %s1033_s25 }
 0x37b   : > { %s1372_s25 = smov %s1037_s26  ;;  %s1373_s26 = smov %s1211_s17 }
 0x37c   : > { %s1374_s27 = smov %s1202_s13  ;;  %23 = sbr.rel (!%p21_p2) target bundleno = 6 (0x6), region = 101 }
 0x383   :  { %620 = vsyncpa [#allocation3], 1 }
 0x384   :  { %622 = vsyncpa [#allocation3 + $0x1], 1 }
 0x385   :  { %623 = vsyncpa [#allocation6], 1 }
 0x386   :  { %624 = vsyncpa [#allocation4], 1 }
 0x387   :  { %626 = vsyncpa [#allocation4 + $0x1], 1 }

</bundles_post_ra>
